<compile_context>
chip_gen: v6e
topology: v6e:2x2x1
jax: 0.10.0
libtpu: 0.0.40
codegen_flags: <defaults>
</compile_context>

<pallas_src>
import math
import functools

import jax
import jax.numpy as jnp
from jax import lax
from jax.experimental import pallas as pl
from jax.experimental.pallas import tpu as pltpu


def make_positional_table(d_model: int, max_len: int) -> jnp.ndarray:
    """Deterministic parameter setup: pe[max_len, d_model] (glue, plain JAX)."""
    position = jnp.arange(max_len, dtype=jnp.float32)[:, None]            # [L, 1]
    div_term = jnp.exp(jnp.arange(0, d_model, 2, dtype=jnp.float32)
                       * (-math.log(10000.0) / d_model))                  # [D/2]
    pe = jnp.zeros((max_len, d_model), dtype=jnp.float32)
    pe = pe.at[:, 0::2].set(jnp.sin(position * div_term))
    pe = pe.at[:, 1::2].set(jnp.cos(position * div_term))
    return pe


def _choose_tile_s(S: int, B: int, D: int, itemsize: int,
                   vmem_budget_bytes: int = 12 << 20, min_steps: int = 4) -> int:
    """Largest multiple-of-8 divisor of S whose per-step pipeline footprint
    (2x x-in buffers + 2x out buffers + 2x pe buffers) fits the budget,
    preferring at least `min_steps` grid steps for software pipelining."""
    per_row = 4 * B * D * itemsize + 2 * D * 4
    max_rows = max(8, vmem_budget_bytes // per_row)
    divisors = [t for t in range(8, S + 1, 8) if S % t == 0]
    if not divisors:
        return S                      # S not a multiple of 8 -> single full block
    fitting = [t for t in divisors if t <= max_rows]
    if not fitting:
        return divisors[0]
    pipelined = [t for t in fitting if S // t >= min_steps]
    return max(pipelined) if pipelined else max(fitting)


def _pos_enc_kernel(x_ref, pe_ref, o_ref, *,
                    p: float, training: bool, seed: int,
                    tile_s: int, seq_len: int, d_model: int):
    # x_ref: (B, tile_s, D)   pe_ref: (tile_s, D)   o_ref: (B, tile_s, D)
    # pe add: free leading-axis broadcast (no cross-sublane relayout).
    y = x_ref[...].astype(jnp.float32) + pe_ref[...][None, :, :]

    if training and p > 0.0:
        # Counter-based dropout: hash of the absolute element index (so the
        # mask does not depend on tile_s / grid shape), integer-domain keep test.
        shape = y.shape
        b_idx = lax.broadcasted_iota(jnp.int32, shape, 0).astype(jnp.uint32)
        s_idx = lax.broadcasted_iota(jnp.int32, shape, 1).astype(jnp.uint32)
        d_idx = lax.broadcasted_iota(jnp.int32, shape, 2).astype(jnp.uint32)
        row = (pl.program_id(0) * tile_s).astype(jnp.uint32) + s_idx
        flat = (b_idx * jnp.uint32(seq_len) + row) * jnp.uint32(d_model) + d_idx
        h = flat + jnp.uint32((seed * 0x9E3779B9) & 0xFFFFFFFF)
        h = (h ^ (h >> 16)) * jnp.uint32(0x7FEB352D)          # lowbias32 mixer
        h = (h ^ (h >> 15)) * jnp.uint32(0x846CA68B)
        h = h ^ (h >> 16)
        # P(drop) = thresh / 2^32 ~= p  (no float uniform conversion needed)
        thresh = jnp.uint32(min(int(round(p * 4294967296.0)), 0xFFFFFFFF))
        keep = h >= thresh
        y = jnp.where(keep, y * jnp.float32(1.0 / (1.0 - p)), jnp.float32(0.0))

    o_ref[...] = y.astype(o_ref.dtype)


def positional_encoding_bsd(x: jnp.ndarray,
                            pe_table: jnp.ndarray,
                            *,
                            p: float = 0.1,
                            training: bool = False,
                            seed: int = 0,
                            tile_s: int | None = None) -> jnp.ndarray:
    """Native (TPU-friendly) entry: x is [batch, seq, d_model]."""
    B, S, D = x.shape
    max_len = pe_table.shape[0]
    assert S <= max_len, "sequence longer than positional table"

    if tile_s is None:
        tile_s = _choose_tile_s(S, B, D, x.dtype.itemsize)
    assert S % tile_s == 0
    grid = (S // tile_s,)

    # Window the full pe table inside the pipeline via the index_map (no slice
    # copy in the wrapper).  Fall back to a slice only when tile_s is not a
    # multiple of 8 (block must then equal the full array dims).
    if tile_s % 8 == 0 or tile_s == max_len:
        pe_in = pe_table
    else:
        pe_in = pe_table[:S]   # TODO(synk): rare glue copy when S % 8 != 0

    kernel = functools.partial(
        _pos_enc_kernel, p=float(p), training=bool(training), seed=int(seed),
        tile_s=int(tile_s), seq_len=int(S), d_model=int(D))

    return pl.pallas_call(
        kernel,
        out_shape=jax.ShapeDtypeStruct((B, S, D), x.dtype),
        grid_spec=pltpu.PrefetchScalarGridSpec(
            num_scalar_prefetch=0,
            grid=grid,
            in_specs=[
                pl.BlockSpec((B, tile_s, D), lambda i: (0, i, 0)),
                pl.BlockSpec((tile_s, D), lambda i: (i, 0)),
            ],
            out_specs=pl.BlockSpec((B, tile_s, D), lambda i: (0, i, 0)),
        ),
        compiler_params=pltpu.CompilerParams(
            dimension_semantics=("parallel",),      # steps independent -> megacore
            vmem_limit_bytes=32 * 1024 * 1024),     # explicit, v7x (64 MiB) safe
    )(x, pe_in)


def positional_encoding(x: jnp.ndarray,
                        pe_table: jnp.ndarray,
                        *,
                        p: float = 0.1,
                        training: bool = False,
                        seed: int = 0,
                        tile_s: int | None = None) -> jnp.ndarray:
    """Module-layout entry: x is [seq_len, batch, d_model] like the PyTorch
    forward.  Transposes to [batch, seq, d_model] at the boundary so that
    (seq, d_model) land on the (sublane, lane) axes inside the kernel."""
    x_bsd = jnp.transpose(x, (1, 0, 2))
    out = positional_encoding_bsd(x_bsd, pe_table, p=p, training=training,
                                  seed=seed, tile_s=tile_s)
    return jnp.transpose(out, (1, 0, 2))


if __name__ == "__main__":
    # Small shapes consistent with the module forward: [seq_len, batch, d_model].
    # d_model is a multiple of 128 so output stores are lane-dense.
    seq_len, batch, d_model, max_len = 256, 2, 128, 512
    dropout_p = 0.1

    key = jax.random.PRNGKey(0)
    x = jax.random.normal(key, (seq_len, batch, d_model), dtype=jnp.float32)

    pe_table = make_positional_table(d_model, max_len)

    # Eval-mode forward (dropout is identity) — matches model.eval().
    out_eval = jax.block_until_ready(
        positional_encoding(x, pe_table, p=dropout_p, training=False))
    ref = x + pe_table[:seq_len][:, None, :]
    assert jnp.allclose(out_eval, ref, atol=1e-5), "eval-mode mismatch vs reference"

    # Training-mode forward (stochastic dropout, deterministic given the seed).
    # TODO(synk): PyTorch's dropout RNG stream cannot be bit-matched; the kernel
    # uses a counter-based hash mask with the same keep-prob and 1/(1-p) scaling.
    out_train = jax.block_until_ready(
        positional_encoding(x, pe_table, p=dropout_p, training=True, seed=123))
    scaled = ref / (1.0 - dropout_p)
    is_dropped = jnp.abs(out_train) < 1e-6
    is_kept = jnp.abs(out_train - scaled) < 1e-4 * (1.0 + jnp.abs(scaled))
    assert bool(jnp.all(is_dropped | is_kept)), "training values not in {0, y/(1-p)}"
    drop_frac = float(jnp.mean(is_dropped.astype(jnp.float32)))
    assert 0.02 < drop_frac < 0.3, f"drop fraction {drop_frac} far from p={dropout_p}"

    print("KERNEL_OK")
</pallas_src>

<mosaic_0001>
module attributes {stable_mosaic.version = 11 : i64} {
  func.func @_pos_enc_kernel(%arg0: i32, %arg1: memref<2x64x128xf32, #tpu.memory_space<vmem>>, %arg2: memref<64x128xf32, #tpu.memory_space<vmem>>, %arg3: memref<2x64x128xf32, #tpu.memory_space<vmem>>) attributes {dimension_semantics = [#tpu.dimension_semantics<parallel>], iteration_bounds = array<i64: 4>, scalar_prefetch = 0 : i64, scratch_operands = 0 : i64, tpu.core_type = #tpu.core_type<tc>, window_params = [{transform_indices = @transform_0, window_bounds = array<i64: 2, 64, 128>}, {transform_indices = @transform_1, window_bounds = array<i64: 64, 128>}, {transform_indices = @transform_2, window_bounds = array<i64: 2, 64, 128>}]} {
    %c0 = arith.constant 0 : index
    %c0_0 = arith.constant 0 : index
    %c0_1 = arith.constant 0 : index
    %0 = vector.load %arg1[%c0, %c0_0, %c0_1] : memref<2x64x128xf32, #tpu.memory_space<vmem>>, vector<2x64x128xf32>
    %c0_2 = arith.constant 0 : index
    %c0_3 = arith.constant 0 : index
    %1 = vector.load %arg2[%c0_2, %c0_3] : memref<64x128xf32, #tpu.memory_space<vmem>>, vector<64x128xf32>
    %2 = vector.shape_cast %1 : vector<64x128xf32> to vector<1x64x128xf32>
    %3 = vector.broadcast %2 : vector<1x64x128xf32> to vector<2x64x128xf32>
    %4 = arith.addf %0, %3 : vector<2x64x128xf32>
    %c0_4 = arith.constant 0 : index
    %c0_5 = arith.constant 0 : index
    %c0_6 = arith.constant 0 : index
    %5 = vector.load %arg3[%c0_4, %c0_5, %c0_6] : memref<2x64x128xf32, #tpu.memory_space<vmem>>, vector<2x64x128xf32>
    tpu.vector_store %arg3[%c0_4, %c0_5, %c0_6], %4 {strides = array<i32>} : memref<2x64x128xf32, #tpu.memory_space<vmem>>, vector<2x64x128xf32>,
    return
  }
  func.func @transform_0(%arg0: i32) -> (i32, i32, i32) {
    %c0_i32 = arith.constant 0 : i32
    %c0_i32_0 = arith.constant 0 : i32
    %c0_i32_1 = arith.constant 0 : i32
    return %c0_i32, %arg0, %c0_i32_0 : i32, i32, i32
  }
  func.func @transform_1(%arg0: i32) -> (i32, i32) {
    %c0_i32 = arith.constant 0 : i32
    %c0_i32_0 = arith.constant 0 : i32
    return %arg0, %c0_i32 : i32, i32
  }
  func.func @transform_2(%arg0: i32) -> (i32, i32, i32) {
    %c0_i32 = arith.constant 0 : i32
    %c0_i32_0 = arith.constant 0 : i32
    %c0_i32_1 = arith.constant 0 : i32
    return %c0_i32, %arg0, %c0_i32_0 : i32, i32, i32
  }
}

</mosaic_0001>

<bundles_post_ra>
// kernel: tpu_custom_call.1
= control target key start
LH: loop header
LB: loop body
LE: loop exit
PB: predicated region body
PF: predicated region fallthrough
CT: control target
= control target key end

     0   :  { %7 = vsyncpa [#allocation3], 0  ;;  %s813_s0 = inlined_call_operand.hbm [shape: f32[2,256,128], index: 0, kind: input, shape index: {}]   ;;  %s814_s1 = inlined_call_operand.hbm [shape: f32[512,128], index: 1, kind: input, shape index: {}]   ;;  %s815_s2 = inlined_call_operand.hbm [shape: f32[2,256,128], index: 2, kind: output, shape index: {}]  }
   0x1   :  { %9 = vsyncpa [#allocation3 + $0x1], 0 }
   0x2   :  { %10 = vsyncpa [#allocation6], 0 }
   0x3   :  { %12 = vsyncpa [#allocation6 + $0x1], 0 }
   0x4   :  { %13 = vsyncpa [#allocation4], 0 }
   0x5   :  { %15 = vsyncpa [#allocation4 + $0x1], 0  ;;  %s610_s9 = smov 0   ;;  %s612_s10 = smov 0  }
   0x6   :  { %s614_s11 = smov 0   ;;  %s616_s12 = smov 0  }
   0x7 LB: > { %s631_s13 = sadd.s32 4294967295, %s579_s12   ;;  %s419_s14 = sadd.s32 4294967294, %s579_s12   ;;  %s579_s12 = sphi %s616_s12, %s826_s12   ;;  %s575_s11 = sphi %s614_s11, %s825_s11   ;;  %s571_s10 = sphi %s612_s10, %s824_s10   ;;  %s567_s9 = sphi %s610_s9, %s823_s9  }
   0x8   : > { %s635_s15 = sadd.s32 1, %s579_s12   ;;  %s28_s16 = sadd.s32 1, %s575_s11 }
   0x9   : > { %s25_s17 = ssub.s32 %s579_s12, %s635_s15  ;;  %p35_p0 = scmp.ne.s32.totalorder %s575_s11, %s571_s10 }
   0xa   : > { %p26_p1 = scmp.eq.s32.totalorder %s25_s17, 0  ;;  %p36_p2 = scmp.eq.s32.totalorder %s579_s12, 0 }
   0xb   : > { %p41_p3 = scmp.ne.s32.totalorder %s571_s10, %s567_s9  ;;  %p42_p4 = scmp.eq.s32.totalorder %s631_s13, 0 }
   0xc   : > { %s647_s18 = scalar_select %p26_p1, %s575_s11, %s28_s16  }
   0xd   : > { %p649_p5 = por %p36_p2, %p35_p0  ;;  %p653_p6 = por %p42_p4, %p41_p3 }
   0xe   : > { %p91_p7 = scmp.eq.s32.totalorder %s631_s13, 3  ;;  %p97_p8 = scmp.eq.s32.totalorder %s419_s14, 3 }
   0xf   : > { %p421_p11 = scmp.ge.s32.totalorder %s579_s12, 4 }
  0x10   : > { %p658_p9 = por %p91_p7, %p35_p0  ;;  %p662_p10 = por %p97_p8, %p41_p3 }
  0x11   : > { %113 = sbr.rel (%p421_p11) target bundleno = 59 (0x3b), region = 16 }
  0x12   : > { %s819_s21 = scalar_select %p658_p9, 1, 0 }
  0x13   : > { %s820_s22 = scalar_select %p662_p10, 1, 0 }
  0x16   : > { %s668_s23 = sand.u32 1, %s575_s11   ;;  %s439_s25 = sshll.u32 %s579_s12, 10 }
  0x17   : > { %s422_s24 = sshll.u32 %s668_s23, 7  ;;  %s127_s29 = scalar_lea.hbm %s813_s0, %s439_s25 }
  0x18   : > { %s442_s26 = scalar_select %p649_p5, [#allocation0], [#allocation12] }
  0x19   : > { %s121_s3 = scalar_lea.vmem [#allocation2], %s422_s24  ;;  %s581_s5 = smov 4096  }
  0x1a   : > { %s132_s30 = sld [smem:[%s442_s26]]   ;;  %s140_s4 = sshll.u32 %s121_s3, 4  ;;  %s141_s4 = int_to_ptr.vmem [resolvable:$true] %s140_s4 }
  0x1b   : > { %443 = sst [smem:[#allocation9]] (%p649_p5), %s581_s5  ;;  %s582_s6 = smov 1024  }
  0x1c   : > { %444 = sst [smem:[#allocation9 + $0x1]] (%p649_p5), %s582_s6  ;;  %s583_s7 = smov 8  }
  0x1d   : > { %445 = sst [smem:[#allocation9 + $0x2]] (%p649_p5), %s583_s7  ;;  %s584_s8 = smov 128  }
  0x1e   : > { %446 = sst [smem:[#allocation9 + $0x3]] (%p649_p5), %s584_s8  ;;  %s118_s17 = scalar_lea.sflag [#allocation3], %s668_s23 }
  0x1f   : > { %447 = sst [smem:[#allocation9 + $0x4]] (%p649_p5), %s584_s8  ;;  %s585_s24 = smov 131072  }
  0x20   : > { %s425_s14 = sshll.u32 %s132_s30, 26  ;;  %448 = sst [smem:[#allocation9 + $0x5]] (%p649_p5), %s583_s7 }
  0x21   : > { %s426_s16 = sadd.s32 134217728, %s425_s14  ;;  %s427_s26 = sshll.u32 %s668_s23, 6 }
  0x22   : > { %449 = dma.general (%p649_p5), %s127_s29, 2048, %s141_s4, %s118_s17, %s585_s24, [#allocation9], %s426_s16, 0  }
  0x23   : > { %s696_s3 = scalar_lea.hbm %s814_s1, %s439_s25  ;;  %s167_s30 = scalar_lea.vmem [#allocation5], %s427_s26 }
  0x24   : > { %s174_s5 = sshll.u32 %s167_s30, 4  ;;  %s164_s6 = scalar_lea.sflag [#allocation6], %s668_s23  ;;  %s698_s5 = int_to_ptr.vmem [resolvable:$true] %s174_s5 }
  0x25   : > { %s511_s7 = scalar_lea.hbm %s696_s3, 1024  ;;  %s515_s8 = scalar_lea.hbm %s814_s1, 8192 }
  0x26   : > { %p512_p12 = scmp.ne.s32.totalorder %s696_s3, %s511_s7  ;;  %p516_p1 = scmp.lt.s32.totalorder %s696_s3, %s814_s1 }
  0x27   : > { %p517_p2 = scmp.lt.s32.totalorder %s515_s8, %s511_s7 }
  0x28   : > { %p513_p13 = pnand %p512_p12, %p649_p5 }
  0x29   : > { %p518_p3 = por %p517_p2, %p516_p1 }
  0x2a   : > { %p514_p0 = pneg %p513_p13 }
  0x2c   : > { %p519_p4 = pnand %p518_p3, %p514_p0 }
  0x2e   : > { %522 = shalt.err (!%p519_p4)
}
  0x2f   : > { %s523_s16 = scalar_lea.vmem %s698_s5, 1024  ;;  %s586_s17 = smov [#allocation5]  }
  0x30   : > { %p524_p7 = scmp.ne.s32.totalorder %s698_s5, %s523_s16  ;;  %s527_s24 = sshll.u32 %s586_s17, 4  ;;  %s528_s24 = int_to_ptr.vmem [resolvable:$false] %s527_s24 }
  0x31   : > { %s529_s26 = scalar_lea.vmem %s528_s24, 2048  ;;  %p530_p12 = scmp.lt.s32.totalorder %s698_s5, %s528_s24 }
  0x32   : > { %p525_p8 = pnand %p524_p7, %p649_p5  ;;  %p531_p13 = scmp.lt.s32.totalorder %s529_s26, %s523_s16 }
  0x34   : > { %p526_p11 = pneg %p525_p8  ;;  %p532_p10 = por %p531_p13, %p530_p12 }
  0x36   : > { %p533_p9 = pnand %p532_p10, %p526_p11 }
  0x38   : > { %536 = shalt.err (!%p533_p9)
}
  0x39   : > { %s587_s27 = smov 128   ;;  %s588_s28 = smov 8  }
  0x3a   : > { %450 = dma.hbm_to_vmem [thread:$0]  (%p649_p5), %s696_s3, 1024, %s698_s5, %s164_s6, %s587_s27, %s587_s27, %s588_s28  }
  0x3b PF: > { %p430_p0 = scmp.ge.s32.totalorder %s579_s12, 1  ;;  %p182_p1 = scmp.lt.s32.totalorder %s579_s12, 5 }
  0x3d   : > { %p183_p2 = pnand %p430_p0, %p182_p1 }
  0x3e   : > { %s726_s30 = sand.u32 (!%p183_p2), 1, %s571_s10  }
  0x3f   : > { %186 = sbr.rel (%p183_p2) target bundleno = 97 (0x61), region = 28  ;;  %s431_s7 = sshll.u32 (!%p183_p2), %s726_s30, 7 }
  0x40   : > { %s189_s29 = scalar_lea.sflag (!%p183_p2), [#allocation3], %s726_s30  ;;  %s730_s4 = scalar_lea.vmem (!%p183_p2), [#allocation2], %s431_s7 }
  0x44   : > { %554 = dma.done.wait (%p653_p6), %s189_s29, 2048  }
  0x45   : > { %556 = vsyncadd (%p653_p6), %s189_s29, 4294965248  ;;  %s432_s19 = sshll.u32 %s726_s30, 6  ;;  %s198_s23 = scalar_lea.sflag [#allocation6], %s726_s30 }
  0x46   : > { %s201_s3 = scalar_lea.vmem [#allocation5], %s432_s19 }
  0x47   : > { %558 = dma.done.wait (%p653_p6), %s198_s23, 1024  }
  0x48   : > { %560 = vsyncadd (%p653_p6), %s198_s23, 4294966272  ;;  %v230_v0 = vld [vmem:[%s730_s4] sm:$0xff]  ;;  %v231_v2 = vld [vmem:[%s730_s4 + $0x8] sm:$0xff]  ;;  %s747_s20 = scalar_lea.vmem [#allocation7], %s431_s7  ;;  %s287_s5 = scalar_lea.sflag [#allocation4], %s726_s30 }
  0x49   : > { %v246_v1 = vld [vmem:[%s201_s3] sm:$0xff]  ;;  %v247_v4 = vld [vmem:[%s201_s3 + $0x8] sm:$0xff]  ;;  %v232_v5 = vld [vmem:[%s730_s4 + $0x10] sm:$0xff] }
  0x4a   : > { %v254_v3 = vadd.f32 %v246_v1, %v230_v0  ;;  %v248_v6 = vld [vmem:[%s201_s3 + $0x10] sm:$0xff]  ;;  %v255_v7 = vadd.f32 %v247_v4, %v231_v2  ;;  %v233_v9 = vld [vmem:[%s730_s4 + $0x18] sm:$0xff]  ;;  %v234_v11 = vld [vmem:[%s730_s4 + $0x20] sm:$0xff] }
  0x4b   : > { %v256_v8 = vadd.f32 %v248_v6, %v232_v5  ;;  %v249_v10 = vld [vmem:[%s201_s3 + $0x18] sm:$0xff]  ;;  %v250_v13 = vld [vmem:[%s201_s3 + $0x20] sm:$0xff]  ;;  %v235_v14 = vld [vmem:[%s730_s4 + $0x28] sm:$0xff] }
  0x4c   : > { %270 = vst [vmem:[%s747_s20] sm:$0xff] %v254_v3  ;;  %v257_v12 = vadd.f32 %v249_v10, %v233_v9  ;;  %v251_v15 = vld [vmem:[%s201_s3 + $0x28] sm:$0xff]  ;;  %271 = vst [vmem:[%s747_s20 + $0x8] sm:$0xff] %v255_v7  ;;  %v258_v16 = vadd.f32 %v250_v13, %v234_v11  ;;  %v236_v18 = vld [vmem:[%s730_s4 + $0x30] sm:$0xff] }
  0x4d   : > { %272 = vst [vmem:[%s747_s20 + $0x10] sm:$0xff] %v256_v8  ;;  %v259_v17 = vadd.f32 %v251_v15, %v235_v14  ;;  %v252_v19 = vld [vmem:[%s201_s3 + $0x30] sm:$0xff]  ;;  %v237_v20 = vld [vmem:[%s730_s4 + $0x38] sm:$0xff]  ;;  %v238_v23 = vld [vmem:[%s730_s4 + $0x40] sm:$0xff] }
  0x4e   : > { %273 = vst [vmem:[%s747_s20 + $0x18] sm:$0xff] %v257_v12  ;;  %v260_v21 = vadd.f32 %v252_v19, %v236_v18  ;;  %v253_v22 = vld [vmem:[%s201_s3 + $0x38] sm:$0xff]  ;;  %v239_v24 = vld [vmem:[%s730_s4 + $0x48] sm:$0xff]  ;;  %274 = vst [vmem:[%s747_s20 + $0x20] sm:$0xff] %v258_v16  ;;  %v262_v26 = vadd.f32 %v246_v1, %v238_v23 }
  0x4f   : > { %275 = vst [vmem:[%s747_s20 + $0x28] sm:$0xff] %v259_v17  ;;  %v261_v25 = vadd.f32 %v253_v22, %v237_v20  ;;  %v263_v27 = vadd.f32 %v247_v4, %v239_v24  ;;  %v240_v28 = vld [vmem:[%s730_s4 + $0x50] sm:$0xff]  ;;  %v241_v29 = vld [vmem:[%s730_s4 + $0x58] sm:$0xff]  ;;  %v242_v30 = vld [vmem:[%s730_s4 + $0x60] sm:$0xff] }
  0x50   : > { %276 = vst [vmem:[%s747_s20 + $0x30] sm:$0xff] %v260_v21  ;;  %v264_v31 = vadd.f32 %v248_v6, %v240_v28  ;;  %v265_v32 = vadd.f32 %v249_v10, %v241_v29  ;;  %v266_v33 = vadd.f32 %v250_v13, %v242_v30  ;;  %v243_v34 = vld [vmem:[%s730_s4 + $0x68] sm:$0xff]  ;;  %v244_v35 = vld [vmem:[%s730_s4 + $0x70] sm:$0xff]  ;;  %v245_v36 = vld [vmem:[%s730_s4 + $0x78] sm:$0xff] }
  0x51   : > { %277 = vst [vmem:[%s747_s20 + $0x38] sm:$0xff] %v261_v25  ;;  %278 = vst [vmem:[%s747_s20 + $0x40] sm:$0xff] %v262_v26  ;;  %v267_v37 = vadd.f32 %v251_v15, %v243_v34  ;;  %v268_v38 = vadd.f32 %v252_v19, %v244_v35  ;;  %v269_v39 = vadd.f32 %v253_v22, %v245_v36 }
  0x52   : > { %279 = vst [vmem:[%s747_s20 + $0x48] sm:$0xff] %v263_v27  ;;  %280 = vst [vmem:[%s747_s20 + $0x50] sm:$0xff] %v264_v31 }
  0x53   : > { %281 = vst [vmem:[%s747_s20 + $0x58] sm:$0xff] %v265_v32  ;;  %282 = vst [vmem:[%s747_s20 + $0x60] sm:$0xff] %v266_v33 }
  0x54   : > { %283 = vst [vmem:[%s747_s20 + $0x68] sm:$0xff] %v267_v37  ;;  %284 = vst [vmem:[%s747_s20 + $0x70] sm:$0xff] %v268_v38 }
  0x55   : > { %285 = vst [vmem:[%s747_s20 + $0x78] sm:$0xff] %v269_v39 }
  0x56   : > { %s441_s6 = sshll.u32 %s631_s13, 10  ;;  %s310_s8 = sshll.u32 %s747_s20, 4  ;;  %s311_s8 = int_to_ptr.vmem [resolvable:$true] %s310_s8 }
  0x57   : > { %s299_s16 = scalar_lea.hbm %s815_s2, %s441_s6  ;;  %s589_s17 = smov 1024  }
  0x58   : > { %p821_p5 = scmp.ne.s32.totalorder %s819_s21, 0  ;;  %s590_s24 = smov 4096  }
  0x59   : > { %s591_s26 = smov 8   ;;  %s592_s27 = smov 128  }
  0x5a   : > { %453 = sst [smem:[#allocation11]] (%p821_p5), %s589_s17  ;;  %s593_s13 = smov 131072  }
  0x5b   : > { %454 = sst [smem:[#allocation11 + $0x1]] (%p821_p5), %s590_s24  ;;  %s594_s28 = smov 0  }
  0x5c   : > { %455 = sst [smem:[#allocation11 + $0x2]] (%p821_p5), %s591_s26 }
  0x5d   : > { %456 = sst [smem:[#allocation11 + $0x3]] (%p821_p5), %s592_s27 }
  0x5e   : > { %457 = sst [smem:[#allocation11 + $0x4]] (%p821_p5), %s592_s27 }
  0x5f   : > { %458 = sst [smem:[#allocation11 + $0x5]] (%p821_p5), %s591_s26 }
  0x60   : > { %459 = dma.general (%p821_p5), %s311_s8, 2048, %s299_s16, %s287_s5, %s593_s13, [#allocation11], %s594_s28, 0  }
  0x61 PF: > { %p465_p6 = scmp.ge.s32.totalorder %s579_s12, 2  ;;  %s338_s30 = sand.u32 1, %s567_s9  }
  0x62   : > { %p822_p9 = scmp.ne.s32.totalorder %s820_s22, 0  ;;  %s339_s7 = scalar_lea.sflag [#allocation4], %s338_s30 }
  0x64   : > { %p462_p10 = pnand %p465_p6, %p822_p9 }
  0x66   : > { %p463_p3 = pneg %p462_p10 }
  0x68   : > { %562 = dma.done.wait (%p463_p3), %s339_s7, 2048  }
  0x69   : > { %564 = vsyncadd (%p463_p3), %s339_s7, 4294965248  ;;  %p18_p4 = scmp.ge.s32.totalorder %s635_s15, 6   ;;  %s823_s9 = smov %s571_s10 }
  0x6a   : > { %s824_s10 = smov %s575_s11  ;;  %s825_s11 = smov %s647_s18 }
  0x6b   : > { %s826_s12 = smov %s635_s15  ;;  %20 = sbr.rel (!%p18_p4) target bundleno = 7 (0x7), region = 96 }
  0x70   :  { %344 = vsyncpa [#allocation3], 1 }
  0x71   :  { %346 = vsyncpa [#allocation3 + $0x1], 1 }
  0x72   :  { %347 = vsyncpa [#allocation6], 1 }
  0x73   :  { %349 = vsyncpa [#allocation6 + $0x1], 1 }
  0x74   :  { %350 = vsyncpa [#allocation4], 1 }
  0x75   :  { %352 = vsyncpa [#allocation4 + $0x1], 1 }

</bundles_post_ra>
